<compile_context>
chip_gen: v7x
topology: tpu7x:2x2x1
jax: 0.10.0
libtpu: 0.0.40
codegen_flags: <defaults>
</compile_context>

<pallas_src>
import functools
import math

import jax
import jax.numpy as jnp
from jax.experimental import pallas as pl
from jax.experimental.pallas import tpu as pltpu


def _mha_fused_kernel(q_ref, k_ref, v_ref, wt_ref, b_ref, o_ref, *,
                      heads, scale, apply_mask, mxu_dtype):
    G, T, _ = q_ref.shape                 # G = batch_block * heads
    S = k_ref.shape[1]
    dv_h = v_ref.shape[-1]
    M = o_ref.shape[-1]
    Bb = G // heads

    md = mxu_dtype if mxu_dtype is not None else q_ref.dtype

    q = q_ref[...]                        # (G, T, dk_h)
    k = k_ref[...]                        # (G, S, dk_h)
    v = v_ref[...]                        # (G, S, dv_h)

    # Scores for every (batch, head) in one batched MXU pass.  K is consumed
    # in its native (S, dk_h) layout ('gtd,gsd->gts' is the validated Mosaic
    # attention pattern).  The scale is applied to the f32 scores so the
    # arithmetic order matches the PyTorch module.
    s = jnp.einsum('gtd,gsd->gts', q.astype(md), k.astype(md),
                   preferred_element_type=jnp.float32) * scale      # (G,T,S) f32

    if apply_mask:
        # Causal mask built in-kernel: iota + compare ride spare VALU slots,
        # and no S^2 f32 mask ever touches HBM/VMEM.
        # TODO(synk): offset row/col by the Q / KV tile starts once S-tiling lands.
        row = jax.lax.broadcasted_iota(jnp.int32, (T, S), 0)
        col = jax.lax.broadcasted_iota(jnp.int32, (T, S), 1)
        s = jnp.where((col > row)[None, :, :], jnp.float32(-1e30), s)

    # Numerically stable softmax, entirely in f32 (v5e VPU/EUP have no bf16).
    # Exact divide keeps parity with torch softmax; pl.reciprocal(approx=True)
    # would ride the EUP at ~1e-3 accuracy cost.
    m = jnp.max(s, axis=-1, keepdims=True)
    e = jnp.exp(s - m)
    w = e / jnp.sum(e, axis=-1, keepdims=True)

    ctx = jnp.einsum('gts,gsd->gtd', w.astype(md), v.astype(md),
                     preferred_element_type=jnp.float32)            # (G,T,dv_h) f32

    # Fused head-concat + Wo: concat_h(ctx_h) @ Wo^T == sum_h ctx_h @ Wo_h^T.
    # One batched MXU einsum over all (batch, head) pairs, then a tiny static
    # f32 reduce over heads.
    wt = wt_ref[...].astype(md)                                      # (H,dv_h,M)
    wt_rep = jnp.broadcast_to(wt[None], (Bb, heads, dv_h, M)).reshape(G, dv_h, M)
    proj = jnp.einsum('gtd,gdm->gtm', ctx.astype(md), wt_rep,
                      preferred_element_type=jnp.float32)            # (G,T,M) f32
    proj = proj.reshape(Bb, heads, T, M)
    out = proj[:, 0]
    for h in range(1, heads):                                        # heads is small, static
        out = out + proj[:, h]

    # Lane-dense (Bb*T rows per store) output slab + bias.
    o_ref[...] = (out + b_ref[...]).astype(o_ref.dtype)


def multi_head_attention(query_heads, key_heads, value_heads,
                         wo_weight, wo_bias, apply_mask=False,
                         batch_block=None, mxu_dtype=None):
    """query_heads/key_heads/value_heads: length-H lists of
    (B, T, dk_h) / (B, S, dk_h) / (B, S, dv_h) arrays.
    wo_weight: (model_dim, dv) (PyTorch Linear layout), wo_bias: (model_dim,).
    batch_block: batches per grid step (default: all -> grid=(1,); set B//2 on
    v7x to shard across the two TensorCores).
    mxu_dtype: cast matmul operands (e.g. jnp.bfloat16 on v6e/v7x); softmax
    and accumulation stay f32."""
    H = len(query_heads)
    q = jnp.stack(query_heads, axis=1)              # (B, H, T, dk_h)
    k = jnp.stack(key_heads, axis=1)                # (B, H, S, dk_h)
    v = jnp.stack(value_heads, axis=1)              # (B, H, S, dv_h)
    B, _, T, dk_h = q.shape
    S = k.shape[2]
    dv_h = v.shape[3]
    model_dim = wo_weight.shape[0]
    assert wo_weight.shape[1] == H * dv_h

    if batch_block is None:
        batch_block = B                             # single grid step on 1-TC parts
    assert B % batch_block == 0
    nb = B // batch_block
    gb = batch_block * H

    scale = 1.0 / math.sqrt(float(dk_h))            # per-head dk = dk / heads

    # Fold (batch, head) into one leading axis so every in-kernel matmul is a
    # plain batched matmul with no in-kernel transposes (leading-dim reshape
    # is free layout-wise).
    qg = q.reshape(B * H, T, dk_h)
    kg = k.reshape(B * H, S, dk_h)
    vg = v.reshape(B * H, S, dv_h)

    # Per-head slices of Wo^T: wt[h] = (Wo^T)[h*dv_h:(h+1)*dv_h, :].
    wt = wo_weight.T.reshape(H, dv_h, model_dim)
    bias = wo_bias.reshape(1, model_dim)

    kernel = functools.partial(_mha_fused_kernel, heads=H, scale=scale,
                               apply_mask=apply_mask, mxu_dtype=mxu_dtype)

    out = pl.pallas_call(
        kernel,
        out_shape=jax.ShapeDtypeStruct((B, T, model_dim), q.dtype),
        grid=(nb,),
        in_specs=[
            pl.BlockSpec((gb, T, dk_h), lambda i: (i, 0, 0)),
            pl.BlockSpec((gb, S, dk_h), lambda i: (i, 0, 0)),
            pl.BlockSpec((gb, S, dv_h), lambda i: (i, 0, 0)),
            pl.BlockSpec((H, dv_h, model_dim), lambda i: (0, 0, 0)),
            pl.BlockSpec((1, model_dim), lambda i: (0, 0)),
        ],
        out_specs=pl.BlockSpec((batch_block, T, model_dim), lambda i: (i, 0, 0)),
        compiler_params=pltpu.CompilerParams(
            dimension_semantics=("parallel",)),     # v7x: 2 TCs split batch tiles
    )(qg, kg, vg, wt, bias)

    return out                                      # (B, T, model_dim)


def _reference(query_heads, key_heads, value_heads, wo_weight, wo_bias, apply_mask):
    ctxs = []
    for q, k, v in zip(query_heads, key_heads, value_heads):
        dk_h = q.shape[-1]
        scores = jnp.einsum('btd,bsd->bts', q, k) / jnp.sqrt(jnp.float32(dk_h))
        if apply_mask:
            T = q.shape[1]
            m = jnp.triu(jnp.ones((T, T), dtype=bool), 1)
            scores = jnp.where(m[None, :, :], -jnp.inf, scores)
        w = jax.nn.softmax(scores, axis=-1)
        ctxs.append(jnp.einsum('bts,bsd->btd', w, v))
    ctx = jnp.concatenate(ctxs, axis=-1)
    return ctx @ wo_weight.T + wo_bias


if __name__ == "__main__":
    # Small shapes consistent with the module: model_dim=32, dk=dv=32, heads=4
    # -> per-head dk_h = dv_h = 8.  B=2, seq T=S=8.
    B, T, heads = 2, 8, 4
    dk, dv, model_dim = 32, 32, 32
    dk_h, dv_h = dk // heads, dv // heads

    key = jax.random.PRNGKey(0)
    keys = jax.random.split(key, 3 * heads + 2)

    query_heads = [jax.random.normal(keys[h], (B, T, dk_h), jnp.float32)
                   for h in range(heads)]
    key_heads = [jax.random.normal(keys[heads + h], (B, T, dk_h), jnp.float32)
                 for h in range(heads)]
    value_heads = [jax.random.normal(keys[2 * heads + h], (B, T, dv_h), jnp.float32)
                   for h in range(heads)]

    # Deterministic Wo init (PyTorch nn.Linear-style uniform bound).
    bound = 1.0 / math.sqrt(dv)
    wo_weight = jax.random.uniform(keys[-2], (model_dim, dv), jnp.float32,
                                   minval=-bound, maxval=bound)
    wo_bias = jax.random.uniform(keys[-1], (model_dim,), jnp.float32,
                                 minval=-bound, maxval=bound)

    ref = _reference(query_heads, key_heads, value_heads,
                     wo_weight, wo_bias, True)

    # f32 MXU path (parity path).
    out = multi_head_attention(query_heads, key_heads, value_heads,
                               wo_weight, wo_bias, apply_mask=True)
    out = jax.block_until_ready(out)
    assert out.shape == (B, T, model_dim)
    # Tolerance covers TPU default (bf16-pass) matmul precision differences
    # between the fused kernel and the per-head XLA reference.
    assert jnp.allclose(out, ref, rtol=1e-2, atol=1e-2), (
        "f32 path mismatch vs reference: max abs err = "
        f"{float(jnp.max(jnp.abs(out - ref)))}")

    # bf16 MXU path (perf path for v6e / v7x): bf16 matmul operands, f32
    # softmax + accumulation.  Looser tolerance for the bf16 operand rounding.
    out_bf16 = multi_head_attention(query_heads, key_heads, value_heads,
                                    wo_weight, wo_bias, apply_mask=True,
                                    mxu_dtype=jnp.bfloat16)
    out_bf16 = jax.block_until_ready(out_bf16)
    assert jnp.allclose(out_bf16, ref, rtol=1e-1, atol=1e-1), (
        "bf16 path mismatch vs reference: max abs err = "
        f"{float(jnp.max(jnp.abs(out_bf16 - ref)))}")

    print("KERNEL_OK")
</pallas_src>

<mosaic_0001>
module attributes {stable_mosaic.version = 11 : i64} {
  func.func @_mha_fused_kernel(%arg0: i32, %arg1: memref<8x8x8xf32, #tpu.memory_space<vmem>>, %arg2: memref<8x8x8xf32, #tpu.memory_space<vmem>>, %arg3: memref<8x8x8xf32, #tpu.memory_space<vmem>>, %arg4: memref<4x8x32xf32, #tpu.memory_space<vmem>>, %arg5: memref<1x32xf32, #tpu.memory_space<vmem>>, %arg6: memref<2x8x32xf32, #tpu.memory_space<vmem>>) attributes {dimension_semantics = [#tpu.dimension_semantics<parallel>], iteration_bounds = array<i64: 1>, scalar_prefetch = 0 : i64, scratch_operands = 0 : i64, tpu.core_type = #tpu.core_type<tc>, window_params = [{transform_indices = @transform_0, window_bounds = array<i64: 8, 8, 8>}, {transform_indices = @transform_1, window_bounds = array<i64: 8, 8, 8>}, {transform_indices = @transform_2, window_bounds = array<i64: 8, 8, 8>}, {pipeline_mode = #tpu.pipeline_mode<synchronous>, transform_indices = @transform_3, window_bounds = array<i64: 4, 8, 32>}, {pipeline_mode = #tpu.pipeline_mode<synchronous>, transform_indices = @transform_4, window_bounds = array<i64: 1, 32>}, {transform_indices = @transform_5, window_bounds = array<i64: 2, 8, 32>}]} {
    %c0 = arith.constant 0 : index
    %c0_0 = arith.constant 0 : index
    %c0_1 = arith.constant 0 : index
    %0 = vector.load %arg1[%c0, %c0_0, %c0_1] : memref<8x8x8xf32, #tpu.memory_space<vmem>>, vector<8x8x8xf32>
    %c0_2 = arith.constant 0 : index
    %c0_3 = arith.constant 0 : index
    %c0_4 = arith.constant 0 : index
    %1 = vector.load %arg2[%c0_2, %c0_3, %c0_4] : memref<8x8x8xf32, #tpu.memory_space<vmem>>, vector<8x8x8xf32>
    %c0_5 = arith.constant 0 : index
    %c0_6 = arith.constant 0 : index
    %c0_7 = arith.constant 0 : index
    %2 = vector.load %arg3[%c0_5, %c0_6, %c0_7] : memref<8x8x8xf32, #tpu.memory_space<vmem>>, vector<8x8x8xf32>
    "tpu.trace_start"() <{level = 10 : i32, message = "gtd,gsd->gts"}> : () -> ()
    %cst = arith.constant dense<0.000000e+00> : vector<8x8x8xf32>
    %3 = tpu.matmul %0, %1, %cst {dimension_numbers = #tpu.dot_dimension_numbers<[2], [2], [1], [1], [0, 0, 0, 1, 1, 1], [0], [0]>} : vector<8x8x8xf32>, vector<8x8x8xf32>, vector<8x8x8xf32> -> vector<8x8x8xf32>
    "tpu.trace_stop"() : () -> ()
    %cst_8 = arith.constant 0.353553385 : f32
    %4 = vector.broadcast %cst_8 : f32 to vector<8x8x8xf32>
    %5 = arith.mulf %3, %4 : vector<8x8x8xf32>
    %6 = tpu.iota {dimensions = array<i32: 0>} : vector<8x8xi32>
    %7 = tpu.iota {dimensions = array<i32: 1>} : vector<8x8xi32>
    %8 = arith.cmpi sgt, %7, %6 : vector<8x8xi32>
    %9 = vector.shape_cast %8 : vector<8x8xi1> to vector<1x8x8xi1>
    %cst_9 = arith.constant -1.000000e+30 : f32
    %10 = vector.shape_cast %9 : vector<1x8x8xi1> to vector<1x8x8xi1>
    %11 = vector.broadcast %10 : vector<1x8x8xi1> to vector<8x8x8xi1>
    %12 = vector.broadcast %cst_9 : f32 to vector<8x8x8xf32>
    %13 = arith.select %11, %12, %5 : vector<8x8x8xi1>, vector<8x8x8xf32>
    %cst_10 = arith.constant dense<0xFF800000> : vector<8x8xf32>
    %14 = vector.multi_reduction <maximumf>, %13, %cst_10 [2] : vector<8x8x8xf32> to vector<8x8xf32>
    %15 = vector.shape_cast %14 : vector<8x8xf32> to vector<8x8x1xf32>
    %16 = vector.broadcast %15 : vector<8x8x1xf32> to vector<8x8x8xf32>
    %17 = arith.subf %13, %16 : vector<8x8x8xf32>
    %18 = math.exp %17 : vector<8x8x8xf32>
    %cst_11 = arith.constant dense<0.000000e+00> : vector<8x8xf32>
    %19 = vector.multi_reduction <add>, %18, %cst_11 [2] : vector<8x8x8xf32> to vector<8x8xf32>
    %20 = vector.shape_cast %19 : vector<8x8xf32> to vector<8x8x1xf32>
    %21 = vector.broadcast %20 : vector<8x8x1xf32> to vector<8x8x8xf32>
    %22 = arith.divf %18, %21 : vector<8x8x8xf32>
    "tpu.trace_start"() <{level = 10 : i32, message = "gts,gsd->gtd"}> : () -> ()
    %cst_12 = arith.constant dense<0.000000e+00> : vector<8x8x8xf32>
    %23 = tpu.matmul %22, %2, %cst_12 {dimension_numbers = #tpu.dot_dimension_numbers<[2], [1], [1], [2], [0, 0, 0, 1, 1, 2], [0], [0]>} : vector<8x8x8xf32>, vector<8x8x8xf32>, vector<8x8x8xf32> -> vector<8x8x8xf32>
    "tpu.trace_stop"() : () -> ()
    %c0_13 = arith.constant 0 : index
    %c0_14 = arith.constant 0 : index
    %c0_15 = arith.constant 0 : index
    %24 = vector.load %arg4[%c0_13, %c0_14, %c0_15] : memref<4x8x32xf32, #tpu.memory_space<vmem>>, vector<4x8x32xf32>
    %25 = vector.shape_cast %24 : vector<4x8x32xf32> to vector<1x4x8x32xf32>
    %26 = vector.shape_cast %25 : vector<1x4x8x32xf32> to vector<1x4x8x32xf32>
    %27 = vector.broadcast %26 : vector<1x4x8x32xf32> to vector<2x4x8x32xf32>
    %28 = vector.shape_cast %27 : vector<2x4x8x32xf32> to vector<8x8x32xf32>
    "tpu.trace_start"() <{level = 10 : i32, message = "gtd,gdm->gtm"}> : () -> ()
    %cst_16 = arith.constant dense<0.000000e+00> : vector<8x8x32xf32>
    %29 = tpu.matmul %23, %28, %cst_16 {dimension_numbers = #tpu.dot_dimension_numbers<[2], [1], [1], [2], [0, 0, 0, 1, 1, 2], [0], [0]>} : vector<8x8x8xf32>, vector<8x8x32xf32>, vector<8x8x32xf32> -> vector<8x8x32xf32>
    "tpu.trace_stop"() : () -> ()
    %30 = vector.shape_cast %29 : vector<8x8x32xf32> to vector<2x4x8x32xf32>
    %31 = vector.extract_strided_slice %30 {offsets = [0, 0, 0, 0], sizes = [2, 1, 8, 32], strides = [1, 1, 1, 1]} : vector<2x4x8x32xf32> to vector<2x1x8x32xf32>
    %32 = vector.shape_cast %31 : vector<2x1x8x32xf32> to vector<2x8x32xf32>
    %33 = vector.extract_strided_slice %30 {offsets = [0, 1, 0, 0], sizes = [2, 1, 8, 32], strides = [1, 1, 1, 1]} : vector<2x4x8x32xf32> to vector<2x1x8x32xf32>
    %34 = vector.shape_cast %33 : vector<2x1x8x32xf32> to vector<2x8x32xf32>
    %35 = arith.addf %32, %34 : vector<2x8x32xf32>
    %36 = vector.extract_strided_slice %30 {offsets = [0, 2, 0, 0], sizes = [2, 1, 8, 32], strides = [1, 1, 1, 1]} : vector<2x4x8x32xf32> to vector<2x1x8x32xf32>
    %37 = vector.shape_cast %36 : vector<2x1x8x32xf32> to vector<2x8x32xf32>
    %38 = arith.addf %35, %37 : vector<2x8x32xf32>
    %39 = vector.extract_strided_slice %30 {offsets = [0, 3, 0, 0], sizes = [2, 1, 8, 32], strides = [1, 1, 1, 1]} : vector<2x4x8x32xf32> to vector<2x1x8x32xf32>
    %40 = vector.shape_cast %39 : vector<2x1x8x32xf32> to vector<2x8x32xf32>
    %41 = arith.addf %38, %40 : vector<2x8x32xf32>
    %c0_17 = arith.constant 0 : index
    %c0_18 = arith.constant 0 : index
    %42 = vector.load %arg5[%c0_17, %c0_18] : memref<1x32xf32, #tpu.memory_space<vmem>>, vector<1x32xf32>
    %43 = vector.shape_cast %42 : vector<1x32xf32> to vector<1x1x32xf32>
    %44 = vector.broadcast %43 : vector<1x1x32xf32> to vector<2x8x32xf32>
    %45 = arith.addf %41, %44 : vector<2x8x32xf32>
    %c0_19 = arith.constant 0 : index
    %c0_20 = arith.constant 0 : index
    %c0_21 = arith.constant 0 : index
    %46 = vector.load %arg6[%c0_19, %c0_20, %c0_21] : memref<2x8x32xf32, #tpu.memory_space<vmem>>, vector<2x8x32xf32>
    tpu.vector_store %arg6[%c0_19, %c0_20, %c0_21], %45 {strides = array<i32>} : memref<2x8x32xf32, #tpu.memory_space<vmem>>, vector<2x8x32xf32>,
    return
  }
  func.func @transform_0(%arg0: i32) -> (i32, i32, i32) {
    %c0_i32 = arith.constant 0 : i32
    %c0_i32_0 = arith.constant 0 : i32
    %c0_i32_1 = arith.constant 0 : i32
    return %arg0, %c0_i32, %c0_i32_0 : i32, i32, i32
  }
  func.func @transform_1(%arg0: i32) -> (i32, i32, i32) {
    %c0_i32 = arith.constant 0 : i32
    %c0_i32_0 = arith.constant 0 : i32
    %c0_i32_1 = arith.constant 0 : i32
    return %arg0, %c0_i32, %c0_i32_0 : i32, i32, i32
  }
  func.func @transform_2(%arg0: i32) -> (i32, i32, i32) {
    %c0_i32 = arith.constant 0 : i32
    %c0_i32_0 = arith.constant 0 : i32
    %c0_i32_1 = arith.constant 0 : i32
    return %arg0, %c0_i32, %c0_i32_0 : i32, i32, i32
  }
  func.func @transform_3(%arg0: i32) -> (i32, i32, i32) {
    %c0_i32 = arith.constant 0 : i32
    %c0_i32_0 = arith.constant 0 : i32
    %c0_i32_1 = arith.constant 0 : i32
    %c0_i32_2 = arith.constant 0 : i32
    return %c0_i32, %c0_i32_0, %c0_i32_1 : i32, i32, i32
  }
  func.func @transform_4(%arg0: i32) -> (i32, i32) {
    %c0_i32 = arith.constant 0 : i32
    %c0_i32_0 = arith.constant 0 : i32
    %c0_i32_1 = arith.constant 0 : i32
    return %c0_i32, %c0_i32_0 : i32, i32
  }
  func.func @transform_5(%arg0: i32) -> (i32, i32, i32) {
    %c0_i32 = arith.constant 0 : i32
    %c0_i32_0 = arith.constant 0 : i32
    %c0_i32_1 = arith.constant 0 : i32
    return %arg0, %c0_i32, %c0_i32_0 : i32, i32, i32
  }
}

</mosaic_0001>

<bundles_post_ra>
// kernel: tpu_custom_call.1
= control target key start
LH: loop header
LB: loop body
LE: loop exit
PB: predicated region body
PF: predicated region fallthrough
CT: control target
= control target key end

     0   :  { %10 = vsyncpa [#allocation3], 0  ;;  %s2674_s0 = inlined_call_operand.hbm [shape: f32[8,8,8], index: 0, kind: input, shape index: {}]   ;;  %s2675_s1 = inlined_call_operand.hbm [shape: f32[8,8,8], index: 1, kind: input, shape index: {}]   ;;  %s2676_s2 = inlined_call_operand.hbm [shape: f32[8,8,8], index: 2, kind: input, shape index: {}]   ;;  %s2677_s3 = inlined_call_operand.hbm [shape: f32[4,8,32], index: 3, kind: input, shape index: {}]   ;;  %s2678_s4 = inlined_call_operand.vmem [shape: f32[1,32], index: 4, kind: input, shape index: {}]   ;;  %s2679_s5 = inlined_call_operand.hbm [shape: f32[2,8,32], index: 5, kind: output, shape index: {}]  }
   0x1   :  { %11 = vsyncpa [#allocation6], 0 }
   0x2   :  { %12 = vsyncpa [#allocation9], 0 }
   0x3   :  { %13 = vsyncpa [#allocation4], 0  ;;  %s2389_s18 = smov [#allocation5]   ;;  %s2390_s20 = smov [#allocation2]  }
   0x4   :  { %s31_s19 = sshll.u32 %s2389_s18, 4  ;;  %s19_s21 = sshll.u32 %s2390_s20, 4  ;;  %s32_s19 = int_to_ptr.vmem [resolvable:$true] %s31_s19  ;;  %s2428_s21 = int_to_ptr.vmem [resolvable:$true] %s19_s21 }
   0x5   :  { %s2271_s24 = scalar_lea.hbm %s2675_s1, 1024 }
   0x6   :  { %p2272_p0 = scmp.ne.s32.totalorder %s2675_s1, %s2271_s24  ;;  %p2275_p1 = scmp.lt.u32.totalorder %s2271_s24, %s2675_s1 }
   0x8   :  { %p2277_p2 = pnand %p2275_p1, %p2272_p0 }
   0xa   :  { %2280 = shalt.err (!%p2277_p2)
}
   0xb   :  { %s2281_s29 = scalar_lea.vmem %s32_s19, 1024  ;;  %p2286_p4 = scmp.lt.s32.totalorder %s32_s19, %s32_s19 }
   0xc   :  { %p2282_p3 = scmp.ne.s32.totalorder %s32_s19, %s2281_s29  ;;  %p2287_p5 = scmp.lt.s32.totalorder %s2281_s29, %s2281_s29 }
   0xe   :  { %p2288_p6 = por %p2287_p5, %p2286_p4 }
  0x10   :  { %p2289_p7 = pnand %p2288_p6, %p2282_p3 }
  0x12   :  { %2292 = shalt.err (!%p2289_p7)
}
  0x13   :  { %s2391_s30 = smov 128   ;;  %s2392_s6 = smov 8  }
  0x14   :  { %37 = dma.hbm_to_vmem [thread:$0]  %s2675_s1, 1024, %s32_s19, [#allocation6], %s2391_s30, %s2391_s30, %s2392_s6  }
  0x15   :  { %s2293_s11 = scalar_lea.hbm %s2674_s0, 1024 }
  0x16   :  { %p2294_p8 = scmp.ne.s32.totalorder %s2674_s0, %s2293_s11  ;;  %p2297_p9 = scmp.lt.u32.totalorder %s2293_s11, %s2674_s0 }
  0x18   :  { %p2299_p10 = pnand %p2297_p9, %p2294_p8 }
  0x1a   :  { %2302 = shalt.err (!%p2299_p10)
}
  0x1b   :  { %s2303_s16 = scalar_lea.vmem %s2428_s21, 1024  ;;  %p2308_p12 = scmp.lt.s32.totalorder %s2428_s21, %s2428_s21 }
  0x1c   :  { %p2304_p11 = scmp.ne.s32.totalorder %s2428_s21, %s2303_s16  ;;  %p2309_p13 = scmp.lt.s32.totalorder %s2303_s16, %s2303_s16 }
  0x1e   :  { %p2310_p0 = por %p2309_p13, %p2308_p12 }
  0x20   :  { %p2311_p1 = pnand %p2310_p0, %p2304_p11 }
  0x22   :  { %2314 = shalt.err (!%p2311_p1)
}
  0x23   :  { %25 = dma.hbm_to_vmem [thread:$0]  %s2674_s0, 1024, %s2428_s21, [#allocation3], %s2391_s30, %s2391_s30, %s2392_s6  }
  0x24   :  { %s2393_s18 = smov [#allocation7]   ;;  %s2394_s20 = smov [#allocation8]  }
  0x25   :  { %s43_s19 = sshll.u32 %s2393_s18, 4  ;;  %s55_s22 = sshll.u32 %s2394_s20, 4  ;;  %s44_s19 = int_to_ptr.vmem [resolvable:$true] %s43_s19  ;;  %s2465_s22 = int_to_ptr.vmem [resolvable:$true] %s55_s22 }
  0x26   :  { %s2315_s25 = scalar_lea.hbm %s2676_s2, 1024 }
  0x27   :  { %p2316_p2 = scmp.ne.s32.totalorder %s2676_s2, %s2315_s25  ;;  %p2319_p3 = scmp.lt.u32.totalorder %s2315_s25, %s2676_s2 }
  0x29   :  { %p2321_p4 = pnand %p2319_p3, %p2316_p2 }
  0x2b   :  { %2324 = shalt.err (!%p2321_p4)
}
  0x2c   :  { %s2325_s0 = scalar_lea.vmem %s44_s19, 1024  ;;  %p2330_p6 = scmp.lt.s32.totalorder %s44_s19, %s44_s19 }
  0x2d   :  { %p2326_p5 = scmp.ne.s32.totalorder %s44_s19, %s2325_s0  ;;  %p2331_p7 = scmp.lt.s32.totalorder %s2325_s0, %s2325_s0 }
  0x2f   :  { %p2332_p8 = por %p2331_p7, %p2330_p6 }
  0x31   :  { %p2333_p9 = pnand %p2332_p8, %p2326_p5 }
  0x33   :  { %2336 = shalt.err (!%p2333_p9)
}
  0x34   :  { %49 = dma.hbm_to_vmem [thread:$0]  %s2676_s2, 1024, %s44_s19, [#allocation6], %s2391_s30, %s2391_s30, %s2392_s6  }
  0x35   :  { %s2337_s10 = scalar_lea.hbm %s2677_s3, 512 }
  0x36   :  { %p2338_p10 = scmp.ne.s32.totalorder %s2677_s3, %s2337_s10  ;;  %p2341_p11 = scmp.lt.u32.totalorder %s2337_s10, %s2677_s3 }
  0x38   :  { %p2343_p12 = pnand %p2341_p11, %p2338_p10 }
  0x3a   :  { %2346 = shalt.err (!%p2343_p12)
}
  0x3b   :  { %s2347_s15 = scalar_lea.vmem %s2465_s22, 512  ;;  %p2352_p0 = scmp.lt.s32.totalorder %s2465_s22, %s2465_s22 }
  0x3c   :  { %p2348_p13 = scmp.ne.s32.totalorder %s2465_s22, %s2347_s15  ;;  %p2353_p1 = scmp.lt.s32.totalorder %s2347_s15, %s2347_s15 }
  0x3e   :  { %p2354_p2 = por %p2353_p1, %p2352_p0 }
  0x40   :  { %p2355_p3 = pnand %p2354_p2, %p2348_p13 }
  0x42   :  { %2358 = shalt.err (!%p2355_p3)
}
  0x43   :  { %61 = dma.hbm_to_vmem [thread:$0]  %s2677_s3, 512, %s2465_s22, [#allocation9], %s2391_s30, %s2391_s30, %s2392_s6  }
  0x44   :  { %2381 = dma.done.wait [#allocation3], 1024  }
  0x45   :  { %2382 = vsyncadd [#allocation3], 4294966272 }
  0x46   :  { %2383 = dma.done.wait [#allocation6], 2048  }
  0x47   :  { %2384 = vsyncadd [#allocation6], 4294965248 }
  0x48   :  { %2385 = dma.done.wait [#allocation9], 512  }
  0x49   :  { %2386 = vsyncadd [#allocation9], 4294966784  ;;  %v2395_v0 = vmov 0.0   ;;  %vm2396_vm0 = vmmov 0   ;;  %vm100_vm1 = vcmask 64512   ;;  %v84_v1 = vld [vmem:[#allocation5] sm:$0xff]  ;;  %v717_v17 = vlaneseq }
  0x4a   :  { %2110 = vmatprep.subr.mxu0 %v2395_v0  ;;  %2112 = vmatprep.mubr.msk.f32.mxu0 %vm2396_vm0, %v2395_v0  ;;  %v85_v2 = vld [vmem:[#allocation5 + $0x8] sm:$0xff]  ;;  %v76_v3 = vld [vmem:[#allocation2] sm:$0xff]  ;;  %v86_v5 = vld [vmem:[#allocation5 + $0x10] sm:$0xff]  ;;  %vm2007_vm3 = vcmask 261120   ;;  %s2397_s17 = smov [#allocation10]  }
  0x4b   :  { %2115 = vmatprep.subr.mxu1 %v2395_v0  ;;  %2117 = vmatprep.mubr.msk.f32.mxu1 %vm2396_vm0, %v2395_v0  ;;  %v77_v4 = vld [vmem:[#allocation2 + $0x8] sm:$0xff]  ;;  %v87_v6 = vld [vmem:[#allocation5 + $0x18] sm:$0xff]  ;;  %v78_v7 = vld [vmem:[#allocation2 + $0x10] sm:$0xff]  ;;  %v718_v18 = vshrl.u32 %v717_v17, 7  ;;  %v720_v19 = vand.u32 127, %v717_v17  ;;  %s2015_s18 = sshll.u32 %s2397_s17, 4  ;;  %s2016_s18 = int_to_ptr.vmem [resolvable:$true] %s2015_s18 }
  0x4c   :  { %2111 = vmatpush3.xpose.msk.msra.mxu0 %vm100_vm1, %v84_v1  ;;  %2116 = vmatpush3.xpose.msk.msra.mxu1 %vm100_vm1, %v85_v2  ;;  %v88_v8 = vld [vmem:[#allocation5 + $0x20] sm:$0xff]  ;;  %v79_v9 = vld [vmem:[#allocation2 + $0x18] sm:$0xff]  ;;  %v89_v10 = vld [vmem:[#allocation5 + $0x28] sm:$0xff]  ;;  %p2364_p5 = scmp.lt.s32.totalorder %s2016_s18, %s2016_s18 }
  0x4d   :  { %2120 = vmatprep.subr.mxu0 %v2395_v0  ;;  %2125 = vmatprep.subr.mxu1 %v2395_v0  ;;  %v80_v11 = vld [vmem:[#allocation2 + $0x20] sm:$0xff]  ;;  %v90_v12 = vld [vmem:[#allocation5 + $0x30] sm:$0xff]  ;;  %v81_v13 = vld [vmem:[#allocation2 + $0x28] sm:$0xff]  ;;  %vm2548_vm2 = vcmp.gt.s32.totalorder %v720_v19, %v718_v18 }
  0x4e   :  { %v91_v14 = vld [vmem:[#allocation5 + $0x38] sm:$0xff]  ;;  %v82_v15 = vld [vmem:[#allocation2 + $0x30] sm:$0xff] }
  0x4f   :  { %2113 = vmatmul.mubr.msk.f32.vlgmr.msra.gmra.mrb[0].mxu0 %vm100_vm1, %v76_v3  ;;  %2118 = vmatmul.mubr.msk.f32.vlgmr.msra.gmra.mrb[0].mxu1 %vm100_vm1, %v77_v4  ;;  %v83_v16 = vld [vmem:[#allocation2 + $0x38] sm:$0xff] }
  0x50   :  { %2121 = vmatpush3.xpose.msk.msra.mxu0 %vm100_vm1, %v86_v5  ;;  %2122 = vmatprep.mubr.msk.f32.mxu0 %vm2396_vm0, %v2395_v0 }
  0x51   :  { %2130 = vmatprep.subr.mxu0 %v2395_v0  ;;  %2126 = vmatpush3.xpose.msk.msra.mxu1 %vm100_vm1, %v87_v6 }
  0x52   :  { %2127 = vmatprep.mubr.msk.f32.mxu1 %vm2396_vm0, %v2395_v0  ;;  %2135 = vmatprep.subr.mxu1 %v2395_v0 }
  0x53   :  { %2123 = vmatmul.mubr.msk.f32.vlgmr.msra.gmra.mrb[2].mxu0 %vm100_vm1, %v78_v7 }
  0x54   :  { %2131 = vmatpush3.xpose.msk.msra.mxu0 %vm100_vm1, %v88_v8  ;;  %2132 = vmatprep.mubr.msk.f32.mxu0 %vm2396_vm0, %v2395_v0 }
  0x55   :  { %2128 = vmatmul.mubr.msk.f32.vlgmr.msra.gmra.mrb[2].mxu1 %vm100_vm1, %v79_v9  ;;  %2140 = vmatprep.subr.mxu0 %v2395_v0 }
  0x56   :  { %2136 = vmatpush3.xpose.msk.msra.mxu1 %vm100_vm1, %v89_v10  ;;  %2137 = vmatprep.mubr.msk.f32.mxu1 %vm2396_vm0, %v2395_v0 }
  0x57   :  { %2133 = vmatmul.mubr.msk.f32.vlgmr.msra.gmra.mrb[4].mxu0 %vm100_vm1, %v80_v11  ;;  %2145 = vmatprep.subr.mxu1 %v2395_v0 }
  0x58   :  { %2141 = vmatpush3.xpose.msk.msra.mxu0 %vm100_vm1, %v90_v12  ;;  %2142 = vmatprep.mubr.msk.f32.mxu0 %vm2396_vm0, %v2395_v0 }
  0x59   :  { %2138 = vmatmul.mubr.msk.f32.vlgmr.msra.gmra.mrb[4].mxu1 %vm100_vm1, %v81_v13  ;;  %2150 = vmatprep.subr.mxu0 %v2395_v0 }
  0x5a   :  { %2146 = vmatpush3.xpose.msk.msra.mxu1 %vm100_vm1, %v91_v14  ;;  %2147 = vmatprep.mubr.msk.f32.mxu1 %vm2396_vm0, %v2395_v0 }
  0x5b   :  { %2143 = vmatmul.mubr.msk.f32.vlgmr.msra.gmra.mrb[6].mxu0 %vm100_vm1, %v82_v15  ;;  %2155 = vmatprep.subr.mxu1 %v2395_v0 }
  0x5c   :  { %2152 = vmatprep.mubr.msk.f32.mxu0 %vm2396_vm0, %v2395_v0 }
  0x5d   :  { %2148 = vmatmul.mubr.msk.f32.vlgmr.msra.gmra.mrb[6].mxu1 %vm100_vm1, %v83_v16 }
  0x5e   :  { %2157 = vmatprep.mubr.msk.f32.mxu1 %vm2396_vm0, %v2395_v0 }
 0x122   :  { %v173_v20 = vpop.f32.mrb[0].mxu0  ;;  %v249_v21 = vpop.f32.mrb[0].mxu1 }
 0x123   :  { %v709_v23 = vmul.f32 0.35355338, %v173_v20  ;;  %v2114_v24 = vpop.f32.mrb[1].mxu0  ;;  %v710_v25 = vmul.f32 0.35355338, %v249_v21  ;;  %v2119_v26 = vpop.f32.mrb[1].mxu1 }
 0x125   :  { %v724_v27 = vsel %vm2548_vm2, -1e+30, %v709_v23  ;;  %v725_v28 = vsel %vm2548_vm2, -1e+30, %v710_v25 }
 0x126   :  { %v325_v29 = vpop.f32.mrb[2].mxu0  ;;  %v732_v30 = vsel %vm100_vm1, %v724_v27, -inf  ;;  %v735_v34 = vsel %vm100_vm1, %v725_v28, -inf }
 0x127   :  { %v711_v31 = vmul.f32 0.35355338, %v325_v29  ;;  %733 = vmax.xlane.f32.xlu0 %v732_v30  ;;  %v2124_v32 = vpop.f32.mrb[3].mxu0 }
 0x128   :  { %v401_v33 = vpop.f32.mrb[2].mxu1 }
 0x129   :  { %v712_v35 = vmul.f32 0.35355338, %v401_v33  ;;  %v2129_v36 = vpop.f32.mrb[3].mxu1  ;;  %v726_v37 = vsel %vm2548_vm2, -1e+30, %v711_v31 }
 0x12a   :  { %v477_v38 = vpop.f32.mrb[4].mxu0  ;;  %v738_v39 = vsel %vm100_vm1, %v726_v37, -inf }
 0x12b   :  { %v713_v40 = vmul.f32 0.35355338, %v477_v38  ;;  %736 = vmax.xlane.f32.xlu0 %v735_v34  ;;  %739 = vmax.xlane.f32.xlu1 %v738_v39  ;;  %v2134_v41 = vpop.f32.mrb[5].mxu0  ;;  %v727_v42 = vsel %vm2548_vm2, -1e+30, %v712_v35  ;;  %v92_v38 = vld [vmem:[#allocation7] sm:$0xff] }
 0x12c   :  { %v553_v43 = vpop.f32.mrb[4].mxu1  ;;  %v741_v44 = vsel %vm100_vm1, %v727_v42, -inf  ;;  %2151 = vmatpush3.msra.mxu0 %v92_v38  ;;  %v93_v39 = vld [vmem:[#allocation7 + $0x8] sm:$0xff] }
 0x12d   :  { %v714_v45 = vmul.f32 0.35355338, %v553_v43  ;;  %v2139_v46 = vpop.f32.mrb[5].mxu1  ;;  %v728_v47 = vsel %vm2548_vm2, -1e+30, %v713_v40  ;;  %2160 = vmatprep.subr.mxu0 %v2395_v0  ;;  %2156 = vmatpush3.msra.mxu1 %v93_v39 }
 0x12e   :  { %v629_v48 = vpop.f32.mrb[6].mxu0  ;;  %v744_v49 = vsel %vm100_vm1, %v728_v47, -inf  ;;  %2165 = vmatprep.subr.mxu1 %v2395_v0 }
 0x12f   :  { %v715_v50 = vmul.f32 0.35355338, %v629_v48  ;;  %742 = vmax.xlane.f32.xlu1 %v741_v44  ;;  %745 = vmax.xlane.f32.xlu0 %v744_v49  ;;  %v2144_v51 = vpop.f32.mrb[7].mxu0  ;;  %v729_v52 = vsel %vm2548_vm2, -1e+30, %v714_v45  ;;  %v94_v48 = vld [vmem:[#allocation7 + $0x10] sm:$0xff] }
 0x130   :  { %v705_v53 = vpop.f32.mrb[6].mxu1  ;;  %v747_v54 = vsel %vm100_vm1, %v729_v52, -inf }
 0x131   :  { %v716_v55 = vmul.f32 0.35355338, %v705_v53  ;;  %v2149_v56 = vpop.f32.mrb[7].mxu1  ;;  %v730_v57 = vsel %vm2548_vm2, -1e+30, %v715_v50 }
 0x132   :  { %v750_v58 = vsel %vm100_vm1, %v730_v57, -inf  ;;  %v96_v56 = vld [vmem:[#allocation7 + $0x20] sm:$0xff] }
 0x133   :  { %748 = vmax.xlane.f32.xlu1 %v747_v54  ;;  %751 = vmax.xlane.f32.xlu0 %v750_v58  ;;  %v731_v59 = vsel %vm2548_vm2, -1e+30, %v716_v55  ;;  %v95_v54 = vld [vmem:[#allocation7 + $0x18] sm:$0xff] }
 0x134   :  { %v753_v60 = vsel %vm100_vm1, %v731_v59, -inf }
 0x137   :  { %754 = vmax.xlane.f32.xlu1 %v753_v60  ;;  %v97_v60 = vld [vmem:[#allocation7 + $0x28] sm:$0xff] }
 0x1b4   :  { %v734_v61 = vpop.xlane.xlu0 %733 }
 0x1b5   :  { %v756_v62 = vsub.f32 %v724_v27, %v734_v61 }
 0x1b7   :  { %v764_v63 = vmul.f32 1.442695, %v756_v62  ;;  %v98_v62 = vld [vmem:[#allocation7 + $0x30] sm:$0xff] }
 0x1b8   :  { %v737_v1 = vpop.xlane.xlu0 %736  ;;  %v740_v2 = vpop.xlane.xlu1 %739 }
 0x1b9   :  { %2239 = vpow2.f32 %v764_v63  ;;  %v757_v3 = vsub.f32 %v725_v28, %v737_v1  ;;  %v758_v4 = vsub.f32 %v726_v37, %v740_v2 }
 0x1bb   :  { %v766_v5 = vmul.f32 1.442695, %v757_v3  ;;  %v768_v6 = vmul.f32 1.442695, %v758_v4  ;;  %v99_v3 = vld [vmem:[#allocation7 + $0x38] sm:$0xff] }
 0x1bc   :  { %v743_v7 = vpop.xlane.xlu1 %742  ;;  %v746_v8 = vpop.xlane.xlu0 %745 }
 0x1bd   :  { %2241 = vpow2.f32 %v766_v5  ;;  %v759_v9 = vsub.f32 %v727_v42, %v743_v7  ;;  %v760_v10 = vsub.f32 %v728_v47, %v746_v8  ;;  %v1404_v7 = vld [vmem:[#allocation8] sm:$0xff]  ;;  %v1405_v8 = vld [vmem:[#allocation8 + $0x8] sm:$0xff] }
 0x1be   :  { %2243 = vpow2.f32 %v768_v6 }
 0x1bf   :  { %v770_v11 = vmul.f32 1.442695, %v759_v9  ;;  %v772_v12 = vmul.f32 1.442695, %v760_v10  ;;  %v1406_v9 = vld [vmem:[#allocation8 + $0x10] sm:$0xff] }
 0x1c0   :  { %v749_v13 = vpop.xlane.xlu1 %748  ;;  %v752_v14 = vpop.xlane.xlu0 %751 }
 0x1c1   :  { %2245 = vpow2.f32 %v770_v11  ;;  %v761_v15 = vsub.f32 %v729_v52, %v749_v13  ;;  %v762_v16 = vsub.f32 %v730_v57, %v752_v14 }
 0x1c2   :  { %2247 = vpow2.f32 %v772_v12  ;;  %v1407_v12 = vld [vmem:[#allocation8 + $0x18] sm:$0xff] }
 0x1c3   :  { %v2240_v17 = vpop.eup %2239  ;;  %v774_v18 = vmul.f32 1.442695, %v761_v15  ;;  %v776_v19 = vmul.f32 1.442695, %v762_v16 }
 0x1c4   :  { %v755_v20 = vpop.xlane.xlu1 %754  ;;  %v780_v21 = vsel %vm100_vm1, %v2240_v17, 0.0 }
 0x1c5   :  { %2249 = vpow2.f32 %v774_v18  ;;  %v763_v22 = vsub.f32 %v731_v59, %v755_v20  ;;  %781 = vadd.xlane.f32.xlu0 %v780_v21 }
 0x1c6   :  { %2251 = vpow2.f32 %v776_v19 }
 0x1c7   :  { %v2242_v23 = vpop.eup %2241  ;;  %v778_v24 = vmul.f32 1.442695, %v763_v22 }
 0x1c8   :  { %v2244_v25 = vpop.eup %2243  ;;  %v783_v26 = vsel %vm100_vm1, %v2242_v23, 0.0 }
 0x1c9   :  { %2253 = vpow2.f32 %v778_v24  ;;  %784 = vadd.xlane.f32.xlu1 %v783_v26  ;;  %v786_v27 = vsel %vm100_vm1, %v2244_v25, 0.0 }
 0x1ca   :  { %787 = vadd.xlane.f32.xlu0 %v786_v27 }
 0x1cb   :  { %v2246_v28 = vpop.eup %2245 }
 0x1cc   :  { %v2248_v29 = vpop.eup %2247  ;;  %v789_v30 = vsel %vm100_vm1, %v2246_v28, 0.0 }
 0x1cd   :  { %790 = vadd.xlane.f32.xlu1 %v789_v30  ;;  %v792_v31 = vsel %vm100_vm1, %v2248_v29, 0.0 }
 0x1ce   :  { %793 = vadd.xlane.f32.xlu0 %v792_v31 }
 0x1cf   :  { %v2581_v32 = vpop.eup %2249 }
 0x1d0   :  { %v2583_v33 = vpop.eup %2251  ;;  %v795_v34 = vsel %vm100_vm1, %v2581_v32, 0.0 }
 0x1d1   :  { %796 = vadd.xlane.f32.xlu1 %v795_v34  ;;  %v798_v35 = vsel %vm100_vm1, %v2583_v33, 0.0 }
 0x1d2   :  { %799 = vadd.xlane.f32.xlu0 %v798_v35 }
 0x1d3   :  { %v2589_v36 = vpop.eup %2253 }
 0x1d4   :  { %v801_v37 = vsel %vm100_vm1, %v2589_v36, 0.0 }
 0x1d5   :  { %802 = vadd.xlane.f32.xlu1 %v801_v37 }
 0x252   :  { %v782_v40 = vpop.xlane.xlu0 %781 }
 0x253   :  { %2255 = vrcp.f32 %v782_v40 }
 0x256   :  { %v785_v41 = vpop.xlane.xlu1 %784 }
 0x257   :  { %2257 = vrcp.f32 %v785_v41  ;;  %v788_v42 = vpop.xlane.xlu0 %787 }
 0x258   :  { %2259 = vrcp.f32 %v788_v42 }
 0x25a   :  { %v791_v43 = vpop.xlane.xlu1 %790 }
 0x25b   :  { %2261 = vrcp.f32 %v791_v43  ;;  %v794_v44 = vpop.xlane.xlu0 %793 }
 0x25c   :  { %2263 = vrcp.f32 %v794_v44 }
 0x25d   :  { %v2256_v45 = vpop.eup %2255 }
 0x25e   :  { %v805_v46 = vmul.f32 %v2256_v45, %v2240_v17  ;;  %v797_v47 = vpop.xlane.xlu1 %796 }
 0x25f   :  { %2265 = vrcp.f32 %v797_v47  ;;  %v800_v49 = vpop.xlane.xlu0 %799 }
 0x260   :  { %2267 = vrcp.f32 %v800_v49  ;;  %2153 = vmatmul.mubr.msk.f32.vlgmr.msra.gmra.mrb[8].mxu0 %vm100_vm1, %v805_v46 }
 0x261   :  { %v2258_v50 = vpop.eup %2257  ;;  %2161 = vmatpush3.msra.mxu0 %v94_v48  ;;  %2162 = vmatprep.mubr.msk.f32.mxu0 %vm2396_vm0, %v2395_v0 }
 0x262   :  { %v2260_v51 = vpop.eup %2259  ;;  %v807_v52 = vmul.f32 %v2258_v50, %v2242_v23  ;;  %v803_v53 = vpop.xlane.xlu1 %802  ;;  %2170 = vmatprep.subr.mxu0 %v2395_v0 }
 0x263   :  { %v809_v55 = vmul.f32 %v2260_v51, %v2244_v25  ;;  %2269 = vrcp.f32 %v803_v53 }
 0x264   :  { %2158 = vmatmul.mubr.msk.f32.vlgmr.msra.gmra.mrb[8].mxu1 %vm100_vm1, %v807_v52 }
 0x265   :  { %v2262_v57 = vpop.eup %2261  ;;  %2163 = vmatmul.mubr.msk.f32.vlgmr.msra.gmra.mrb[10].mxu0 %vm100_vm1, %v809_v55  ;;  %2166 = vmatpush3.msra.mxu1 %v95_v54 }
 0x266   :  { %v2264_v58 = vpop.eup %2263  ;;  %v811_v59 = vmul.f32 %v2262_v57, %v2246_v28  ;;  %2167 = vmatprep.mubr.msk.f32.mxu1 %vm2396_vm0, %v2395_v0  ;;  %2171 = vmatpush3.msra.mxu0 %v96_v56 }
 0x267   :  { %v813_v61 = vmul.f32 %v2264_v58, %v2248_v29  ;;  %2172 = vmatprep.mubr.msk.f32.mxu0 %vm2396_vm0, %v2395_v0  ;;  %2175 = vmatprep.subr.mxu1 %v2395_v0 }
 0x268   :  { %2168 = vmatmul.mubr.msk.f32.vlgmr.msra.gmra.mrb[10].mxu1 %vm100_vm1, %v811_v59  ;;  %2180 = vmatprep.subr.mxu0 %v2395_v0 }
 0x269   :  { %v2266_v63 = vpop.eup %2265  ;;  %2173 = vmatmul.mubr.msk.f32.vlgmr.msra.gmra.mrb[12].mxu0 %vm100_vm1, %v813_v61  ;;  %2176 = vmatpush3.msra.mxu1 %v97_v60 }
 0x26a   :  { %v2268_v1 = vpop.eup %2267  ;;  %v815_v2 = vmul.f32 %v2266_v63, %v2581_v32  ;;  %2177 = vmatprep.mubr.msk.f32.mxu1 %vm2396_vm0, %v2395_v0  ;;  %2181 = vmatpush3.msra.mxu0 %v98_v62 }
 0x26b   :  { %v817_v4 = vmul.f32 %v2268_v1, %v2583_v33  ;;  %2182 = vmatprep.mubr.msk.f32.mxu0 %vm2396_vm0, %v2395_v0  ;;  %2185 = vmatprep.subr.mxu1 %v2395_v0 }
 0x26c   :  { %2178 = vmatmul.mubr.msk.f32.vlgmr.msra.gmra.mrb[12].mxu1 %vm100_vm1, %v815_v2  ;;  %2190 = vmatprep.subr.mxu0 %v2395_v0 }
 0x26d   :  { %v2270_v5 = vpop.eup %2269  ;;  %2183 = vmatmul.mubr.msk.f32.vlgmr.msra.gmra.mrb[14].mxu0 %vm100_vm1, %v817_v4  ;;  %2186 = vmatpush3.msra.mxu1 %v99_v3 }
 0x26e   :  { %v819_v6 = vmul.f32 %v2270_v5, %v2589_v36  ;;  %2187 = vmatprep.mubr.msk.f32.mxu1 %vm2396_vm0, %v2395_v0  ;;  %2192 = vmatprep.mubr.msk.f32.mxu0 %vm2396_vm0, %v2395_v0  ;;  %v2061_v36 = vld [vmem:[%s2678_s4] ss:$0 sm:$0xff]  ;;  %s2359_s4 = scalar_lea.vmem %s2016_s18, 256 }
 0x26f   :  { %2195 = vmatprep.subr.mxu1 %v2395_v0  ;;  %2191 = vmatpush3.msra.mxu0 %v1404_v7  ;;  %p2360_p4 = scmp.ne.s32.totalorder %s2016_s18, %s2359_s4  ;;  %p2365_p6 = scmp.lt.s32.totalorder %s2359_s4, %s2359_s4 }
 0x270   :  { %2188 = vmatmul.mubr.msk.f32.vlgmr.msra.gmra.mrb[14].mxu1 %vm100_vm1, %v819_v6  ;;  %2200 = vmatprep.subr.mxu0 %v2395_v0 }
 0x271   :  { %2197 = vmatprep.mubr.msk.f32.mxu1 %vm2396_vm0, %v2395_v0  ;;  %2196 = vmatpush3.msra.mxu1 %v1405_v8  ;;  %p2366_p7 = por %p2365_p6, %p2364_p5 }
 0x272   :  { %2205 = vmatprep.subr.mxu1 %v2395_v0 }
 0x273   :  { %p2367_p8 = pnand %p2366_p7, %p2360_p4 }
 0x333   :  { %v889_v10 = vpop.f32.mrb[8].mxu0 }
 0x334   :  { %v2154_v11 = vpop.f32.mrb[9].mxu0  ;;  %2193 = vmatmul.mubr.msk.f32.vlgmr.msra.gmra.mrb[16].mxu0 %vm100_vm1, %v889_v10 }
 0x335   :  { %2201 = vmatpush3.msra.mxu0 %v1406_v9  ;;  %2202 = vmatprep.mubr.msk.f32.mxu0 %vm2396_vm0, %v2395_v0 }
 0x336   :  { %2210 = vmatprep.subr.mxu0 %v2395_v0 }
 0x337   :  { %v962_v13 = vpop.f32.mrb[8].mxu1 }
 0x338   :  { %v1035_v14 = vpop.f32.mrb[10].mxu0  ;;  %v2159_v15 = vpop.f32.mrb[9].mxu1  ;;  %2198 = vmatmul.mubr.msk.f32.vlgmr.msra.gmra.mrb[16].mxu1 %vm100_vm1, %v962_v13 }
 0x339   :  { %v2164_v16 = vpop.f32.mrb[11].mxu0  ;;  %2203 = vmatmul.mubr.msk.f32.vlgmr.msra.gmra.mrb[18].mxu0 %vm100_vm1, %v1035_v14  ;;  %2206 = vmatpush3.msra.mxu1 %v1407_v12 }
 0x33a   :  { %2207 = vmatprep.mubr.msk.f32.mxu1 %vm2396_vm0, %v2395_v0  ;;  %2211 = vmatpush3.msra.mxu0 %v1404_v7 }
 0x33b   :  { %v1108_v17 = vpop.f32.mrb[10].mxu1  ;;  %2212 = vmatprep.mubr.msk.f32.mxu0 %vm2396_vm0, %v2395_v0  ;;  %2215 = vmatprep.subr.mxu1 %v2395_v0 }
 0x33c   :  { %v1181_v18 = vpop.f32.mrb[12].mxu0  ;;  %v2169_v19 = vpop.f32.mrb[11].mxu1  ;;  %2208 = vmatmul.mubr.msk.f32.vlgmr.msra.gmra.mrb[18].mxu1 %vm100_vm1, %v1108_v17  ;;  %2220 = vmatprep.subr.mxu0 %v2395_v0 }
 0x33d   :  { %v2174_v20 = vpop.f32.mrb[13].mxu0  ;;  %2213 = vmatmul.mubr.msk.f32.vlgmr.msra.gmra.mrb[20].mxu0 %vm100_vm1, %v1181_v18  ;;  %2216 = vmatpush3.msra.mxu1 %v1405_v8 }
 0x33e   :  { %2217 = vmatprep.mubr.msk.f32.mxu1 %vm2396_vm0, %v2395_v0  ;;  %2221 = vmatpush3.msra.mxu0 %v1406_v9 }
 0x33f   :  { %v1254_v21 = vpop.f32.mrb[12].mxu1  ;;  %2222 = vmatprep.mubr.msk.f32.mxu0 %vm2396_vm0, %v2395_v0  ;;  %2225 = vmatprep.subr.mxu1 %v2395_v0 }
 0x340   :  { %v1327_v22 = vpop.f32.mrb[14].mxu0  ;;  %v2179_v23 = vpop.f32.mrb[13].mxu1  ;;  %2218 = vmatmul.mubr.msk.f32.vlgmr.msra.gmra.mrb[20].mxu1 %vm100_vm1, %v1254_v21 }
 0x341   :  { %v2184_v24 = vpop.f32.mrb[15].mxu0  ;;  %2223 = vmatmul.mubr.msk.f32.vlgmr.msra.gmra.mrb[22].mxu0 %vm100_vm1, %v1327_v22  ;;  %2226 = vmatpush3.msra.mxu1 %v1407_v12 }
 0x342   :  { %2227 = vmatprep.mubr.msk.f32.mxu1 %vm2396_vm0, %v2395_v0 }
 0x343   :  { %v1400_v25 = vpop.f32.mrb[14].mxu1 }
 0x344   :  { %v2189_v26 = vpop.f32.mrb[15].mxu1  ;;  %2228 = vmatmul.mubr.msk.f32.vlgmr.msra.gmra.mrb[22].mxu1 %vm100_vm1, %v1400_v25 }
 0x407   :  { %v1477_v27 = vpop.f32.mrb[16].mxu0 }
 0x408   :  { %v2194_v28 = vpop.f32.mrb[17].mxu0 }
 0x40b   :  { %v1550_v29 = vpop.f32.mrb[16].mxu1 }
 0x40c   :  { %v1992_v30 = vadd.f32 %v1550_v29, %v1477_v27  ;;  %v1623_v31 = vpop.f32.mrb[18].mxu0  ;;  %v2199_v32 = vpop.f32.mrb[17].mxu1 }
 0x40d   :  { %v2204_v33 = vpop.f32.mrb[19].mxu0 }
 0x40e   :  { %v1994_v34 = vadd.f32 %v1992_v30, %v1623_v31 }
 0x40f   :  { %v1696_v35 = vpop.f32.mrb[18].mxu1 }
 0x410   :  { %v1996_v37 = vadd.f32 %v1994_v34, %v1696_v35  ;;  %v1769_v38 = vpop.f32.mrb[20].mxu0  ;;  %v2209_v0 = vpop.f32.mrb[19].mxu1 }
 0x411   :  { %v2214_v39 = vpop.f32.mrb[21].mxu0 }
 0x412   :  { %v2005_v40 = vadd.f32 %v2061_v36, %v1996_v37 }
 0x413   :  { %v1842_v41 = vpop.f32.mrb[20].mxu1 }
 0x414   :  { %v1993_v42 = vadd.f32 %v1842_v41, %v1769_v38  ;;  %v1915_v43 = vpop.f32.mrb[22].mxu0  ;;  %v2219_v44 = vpop.f32.mrb[21].mxu1  ;;  %2008 = vst.msk [vmem:[#allocation10] sm:$0xff] %vm2007_vm3, %v2005_v40 }
 0x415   :  { %v2224_v45 = vpop.f32.mrb[23].mxu0 }
 0x416   :  { %v1995_v46 = vadd.f32 %v1993_v42, %v1915_v43 }
 0x417   :  { %v1988_v47 = vpop.f32.mrb[22].mxu1 }
 0x418   :  { %v1997_v48 = vadd.f32 %v1995_v46, %v1988_v47  ;;  %v2229_v49 = vpop.f32.mrb[23].mxu1 }
 0x41a   :  { %v2006_v50 = vadd.f32 %v2061_v36, %v1997_v48 }
 0x41c   :  { %2009 = vst.msk [vmem:[#allocation10 + $0x8] sm:$0xff] %vm2007_vm3, %v2006_v50 }
 0x41d   :  { %2370 = shalt.err (!%p2367_p8)
}
 0x41e   :  { %s2371_s22 = scalar_lea.hbm %s2679_s5, 256 }
 0x41f   :  { %p2372_p9 = scmp.ne.s32.totalorder %s2679_s5, %s2371_s22  ;;  %p2375_p10 = scmp.lt.u32.totalorder %s2371_s22, %s2679_s5 }
 0x421   :  { %p2377_p11 = pnand %p2375_p10, %p2372_p9 }
 0x423   :  { %2380 = shalt.err (!%p2377_p11)
}
 0x424   :  { %2021 = dma.vmem_to_hbm [thread:$0]  %s2016_s18, 256, %s2679_s5, [#allocation4], %s2391_s30, %s2391_s30, %s2392_s6  }
 0x425   :  { %2387 = dma.done.wait [#allocation4], 256  }
 0x426   :  { %2388 = vsyncadd [#allocation4], 4294967040 }
 0x427   :  { %2025 = vsyncpa [#allocation3], 1 }
 0x428   :  { %2026 = vsyncpa [#allocation6], 1 }
 0x429   :  { %2027 = vsyncpa [#allocation9], 1 }
 0x42a   :  { %2028 = vsyncpa [#allocation4], 1 }

</bundles_post_ra>
